<compile_context>
chip_gen: v6e
topology: v6e:2x2x1
jax: 0.10.0
libtpu: 0.0.40
codegen_flags: <defaults>
</compile_context>

<pallas_src>
import jax
import jax.numpy as jnp
from jax.experimental import pallas as pl
from jax.experimental.pallas import tpu as pltpu


def _patch_embed_kernel(p_ref, w_ref, pos_ref, o_ref):
    # p_ref:   (T, D) bf16   patch rows for one batch element (row 0 is zeros)
    # w_ref:   (D, E) bf16   W^T, VMEM-resident
    # pos_ref: (T, E) f32    row 0 = cls + pos[0]; rows 1.. = pos[1:] + bias; resident
    # o_ref:   (T, E) f32
    y = jnp.dot(p_ref[...], w_ref[...], preferred_element_type=jnp.float32)  # MXU, f32 acc
    o_ref[...] = (y + pos_ref[...]).astype(o_ref.dtype)


def patch_embedding_pallas(x, weight, bias, cls_token, positions, patch_size):
    """x: (B, C, H, W) NCHW float32. Returns (B, N+1, E) matching the PyTorch forward."""
    B, C, H, W = x.shape
    s = patch_size
    hp, wp = H // s, W // s
    N = hp * wp
    D = s * s * C
    E = weight.shape[0]  # nn.Linear weight is (out, in)
    T = N + 1

    # einops 'b c (h s1) (w s2) -> b (h w) (s1 s2 c)'.  Cast to bf16 first so the
    # materialized transpose moves half the bytes (cast fuses with the transpose).
    xb = x.astype(jnp.bfloat16)
    patches = xb.reshape(B, C, hp, s, wp, s)         # (B, C, hp, s1, wp, s2)
    patches = patches.transpose(0, 2, 4, 3, 5, 1)    # (B, hp, wp, s1, s2, C)
    patches = patches.reshape(B, N, D)               # (B, N, D) bf16
    # One zero row per batch -> kernel writes the (N+1)-token layout directly;
    # the zero row's matmul contributes nothing, the cls content rides in pos_bias.
    patches = jnp.pad(patches, ((0, 0), (1, 0), (0, 0)))  # (B, T, D) bf16

    w_t = weight.T.astype(jnp.bfloat16)              # (D, E)

    # Fused additive table (tiny, VMEM-resident across all grid steps):
    #   row 0   : cls_token + positions[0]        (cls row; no linear bias)
    #   row 1.. : positions[1:] + linear bias     (patch rows)
    cls_row = cls_token.reshape(1, E) + positions[0:1, :]
    pos_bias = jnp.concatenate([cls_row, positions[1:, :] + bias[None, :]], axis=0)
    pos_bias = pos_bias.astype(jnp.float32)          # (T, E)

    out = pl.pallas_call(
        _patch_embed_kernel,
        out_shape=jax.ShapeDtypeStruct((B, T, E), x.dtype),
        grid_spec=pltpu.PrefetchScalarGridSpec(
            num_scalar_prefetch=0,
            grid=(B,),
            in_specs=[
                pl.BlockSpec((None, T, D), lambda b: (b, 0, 0)),  # streamed patches
                pl.BlockSpec((D, E), lambda b: (0, 0)),           # W^T, VMEM-resident
                pl.BlockSpec((T, E), lambda b: (0, 0)),           # pos+bias, VMEM-resident
            ],
            out_specs=pl.BlockSpec((None, T, E), lambda b: (b, 0, 0)),
        ),
        compiler_params=pltpu.CompilerParams(
            dimension_semantics=("parallel",),
            vmem_limit_bytes=32 * 1024 * 1024,   # safe on v7x (64 MiB physical VMEM)
        ),
    )(patches, w_t, pos_bias)
    return out  # (B, N+1, E)


def patch_embedding_ref(x, weight, bias, cls_token, positions, patch_size):
    """Plain-JAX f32 reference mirroring the PyTorch forward."""
    B, C, H, W = x.shape
    s = patch_size
    hp, wp = H // s, W // s
    patches = x.reshape(B, C, hp, s, wp, s).transpose(0, 2, 4, 3, 5, 1)
    patches = patches.reshape(B, hp * wp, s * s * C)
    y = patches @ weight.T + bias                         # (B, N, E)
    cls = jnp.broadcast_to(cls_token.reshape(1, 1, -1), (B, 1, weight.shape[0]))
    y = jnp.concatenate([cls, y], axis=1)
    return y + positions[None, :, :]


if __name__ == "__main__":
    # Small shapes consistent with the module's forward:
    # in_channels=4, patch_size=4, emb_size=32, img_size=16 -> N = (16/4)^2 = 16
    B, C, H, W = 2, 4, 16, 16
    patch_size = 4
    emb_size = 32
    N = (H // patch_size) * (W // patch_size)
    D = patch_size * patch_size * C

    key = jax.random.PRNGKey(0)
    kx, kw, kb, kc, kp = jax.random.split(key, 5)
    x = jax.random.normal(kx, (B, C, H, W), dtype=jnp.float32)
    weight = jax.random.normal(kw, (emb_size, D), dtype=jnp.float32) * 0.02   # (out, in)
    bias = jax.random.normal(kb, (emb_size,), dtype=jnp.float32) * 0.02
    cls_token = jax.random.normal(kc, (1, 1, emb_size), dtype=jnp.float32)    # (1,1,E)
    positions = jax.random.normal(kp, (N + 1, emb_size), dtype=jnp.float32)   # (N+1,E)

    fn = jax.jit(patch_embedding_pallas, static_argnames=("patch_size",))
    out = jax.block_until_ready(fn(x, weight, bias, cls_token, positions,
                                   patch_size=patch_size))

    ref = patch_embedding_ref(x, weight, bias, cls_token, positions, patch_size)
    assert out.shape == (B, N + 1, emb_size), out.shape
    # Tolerance loosened because matmul operands are bf16 (accumulation stays f32).
    assert jnp.allclose(out, ref, atol=1e-2, rtol=1e-2), "mismatch vs reference"

    print("KERNEL_OK")
</pallas_src>

<mosaic_0001>
module attributes {stable_mosaic.version = 11 : i64} {
  func.func @_patch_embed_kernel(%arg0: i32, %arg1: memref<1x17x64xbf16, #tpu.memory_space<vmem>>, %arg2: memref<64x32xbf16, #tpu.memory_space<vmem>>, %arg3: memref<17x32xf32, #tpu.memory_space<vmem>>, %arg4: memref<1x17x32xf32, #tpu.memory_space<vmem>>) attributes {dimension_semantics = [#tpu.dimension_semantics<parallel>], iteration_bounds = array<i64: 2>, scalar_prefetch = 0 : i64, scratch_operands = 0 : i64, tpu.core_type = #tpu.core_type<tc>, window_params = [{transform_indices = @transform_0, window_bounds = array<i64: 1, 17, 64>}, {pipeline_mode = #tpu.pipeline_mode<synchronous>, transform_indices = @transform_1, window_bounds = array<i64: 64, 32>}, {pipeline_mode = #tpu.pipeline_mode<synchronous>, transform_indices = @transform_2, window_bounds = array<i64: 17, 32>}, {transform_indices = @transform_3, window_bounds = array<i64: 1, 17, 32>}]} {
    %c0 = arith.constant 0 : index
    %c0_0 = arith.constant 0 : index
    %c0_1 = arith.constant 0 : index
    %0 = vector.load %arg1[%c0, %c0_0, %c0_1] : memref<1x17x64xbf16, #tpu.memory_space<vmem>>, vector<1x17x64xbf16>
    %1 = vector.shape_cast %0 : vector<1x17x64xbf16> to vector<17x64xbf16>
    %c0_2 = arith.constant 0 : index
    %c0_3 = arith.constant 0 : index
    %2 = vector.load %arg2[%c0_2, %c0_3] : memref<64x32xbf16, #tpu.memory_space<vmem>>, vector<64x32xbf16>
    %cst = arith.constant dense<0.000000e+00> : vector<17x32xf32>
    %3 = tpu.matmul %1, %2, %cst {dimension_numbers = #tpu.dot_dimension_numbers<[1], [0], [0], [1], [0, 0, 1, 1], [], []>} : vector<17x64xbf16>, vector<64x32xbf16>, vector<17x32xf32> -> vector<17x32xf32>
    %c0_4 = arith.constant 0 : index
    %c0_5 = arith.constant 0 : index
    %4 = vector.load %arg3[%c0_4, %c0_5] : memref<17x32xf32, #tpu.memory_space<vmem>>, vector<17x32xf32>
    %5 = arith.addf %3, %4 : vector<17x32xf32>
    %c0_6 = arith.constant 0 : index
    %c0_7 = arith.constant 0 : index
    %c0_8 = arith.constant 0 : index
    %6 = vector.load %arg4[%c0_6, %c0_7, %c0_8] : memref<1x17x32xf32, #tpu.memory_space<vmem>>, vector<1x17x32xf32>
    %7 = vector.shape_cast %6 : vector<1x17x32xf32> to vector<17x32xf32>
    %8 = vector.shape_cast %5 : vector<17x32xf32> to vector<1x17x32xf32>
    tpu.vector_store %arg4[%c0_6, %c0_7, %c0_8], %8 {strides = array<i32>} : memref<1x17x32xf32, #tpu.memory_space<vmem>>, vector<1x17x32xf32>,
    return
  }
  func.func @transform_0(%arg0: i32) -> (i32, i32, i32) {
    %c0_i32 = arith.constant 0 : i32
    %c0_i32_0 = arith.constant 0 : i32
    %c0_i32_1 = arith.constant 0 : i32
    return %arg0, %c0_i32, %c0_i32_0 : i32, i32, i32
  }
  func.func @transform_1(%arg0: i32) -> (i32, i32) {
    %c0_i32 = arith.constant 0 : i32
    %c0_i32_0 = arith.constant 0 : i32
    %c0_i32_1 = arith.constant 0 : i32
    return %c0_i32, %c0_i32_0 : i32, i32
  }
  func.func @transform_2(%arg0: i32) -> (i32, i32) {
    %c0_i32 = arith.constant 0 : i32
    %c0_i32_0 = arith.constant 0 : i32
    %c0_i32_1 = arith.constant 0 : i32
    return %c0_i32, %c0_i32_0 : i32, i32
  }
  func.func @transform_3(%arg0: i32) -> (i32, i32, i32) {
    %c0_i32 = arith.constant 0 : i32
    %c0_i32_0 = arith.constant 0 : i32
    %c0_i32_1 = arith.constant 0 : i32
    return %arg0, %c0_i32, %c0_i32_0 : i32, i32, i32
  }
}

</mosaic_0001>

<bundles_post_ra>
// kernel: patch_embedding_pallas.1
= control target key start
LH: loop header
LB: loop body
LE: loop exit
PB: predicated region body
PF: predicated region fallthrough
CT: control target
= control target key end

     0   :  { %s412_s12 = smov 0   ;;  %s450_s0 = inlined_call_operand.vmem [shape: bf16[2,17,64], index: 0, kind: input, shape index: {}]   ;;  %s451_s1 = inlined_call_operand.vmem [shape: bf16[64,32], index: 1, kind: input, shape index: {}]   ;;  %s452_s2 = inlined_call_operand.vmem [shape: f32[17,32], index: 2, kind: input, shape index: {}]   ;;  %s453_s3 = inlined_call_operand.vmem [shape: f32[2,17,32], index: 3, kind: output, shape index: {}]  }
   0x1 LB: > { %s333_s13 = sadd.s32 4294967295, %s390_s12   ;;  %p337_p0 = scmp.ge.s32.totalorder %s390_s12, 1  ;;  %s390_s12 = sphi %s412_s12, %s13_s12  }
   0x2   : > { %p137_p1 = scmp.lt.s32.totalorder %s390_s12, 3 }
   0x4   : > { %p138_p2 = pnand %p337_p0, %p137_p1 }
   0x5   : > { %p161_p3 = scmp.lt.s32.totalorder (!%p138_p2), %s333_s13, 1 }
   0x6   : > { %141 = sbr.rel (%p138_p2) target bundleno = 230 (0xe6), region = 32 }
   0xb   : > { %v378_v0 = vld [vmem:[%s451_s1 + $0x18] sm:$0xff]   ;;  %v379_v1 = vld [vmem:[%s451_s1 + $0x10] sm:$0xff]   ;;  %s455_s13 = smov (!%p161_p3, %s333_s13), 1  ;;  %v380_v2 = vld [vmem:[%s451_s1 + $0x8] sm:$0xff]   ;;  %vm218_vm0 = vcmask 523264   ;;  %vm276_vm1 = vcmask 253952  }
   0xc   : > { %356 = vmatprep.subr.bf16.mxu0 %v378_v0  ;;  %s368_s20 = smul.u32 12, %s455_s13  ;;  %v381_v3 = vld [vmem:[%s451_s1] sm:$0xff]   ;;  %v185_v6 = vld [vmem:[%s452_s2 + $0x10] sm:$0x1]  ;;  %vm273_vm2 = vcmask 261120   ;;  %v184_v13 = vld [vmem:[%s452_s2 + $0x8] sm:$0xff] }
   0xd   : > { %357 = vmatpush3.bf16.msra.mxu0 %v378_v0  ;;  %s369_s26 = smul.u32 24, %s455_s13  ;;  %v183_v8 = vld [vmem:[%s452_s2] sm:$0xff] }
   0xe   : > { %358 = vmatprep.subr.bf16.mxu0 %v379_v1  ;;  %s165_s23 = scalar_lea.vmem %s450_s0, %s368_s20 }
   0xf   : > { %v382_v4 = vld [vmem:[%s165_s23] sm:$0xff]   ;;  %v383_v5 = vld [vmem:[%s165_s23 + $0x8] ss:$0 sps:$4 sm:$0x11]   ;;  %s170_s4 = scalar_lea.vmem %s453_s3, %s369_s26 }
  0x10   : > { %364 = vmatprep.mubr.msk.bf16.mxu0 %vm218_vm0, %v382_v4 }
  0x11   : > { %359 = vmatpush3.bf16.msra.mxu0 %v379_v1 }
  0x12   : > { %360 = vmatprep.subr.bf16.mxu0 %v380_v2 }
  0x15   : > { %361 = vmatpush3.bf16.msra.mxu0 %v380_v2 }
  0x16   : > { %362 = vmatprep.subr.bf16.mxu0 %v381_v3 }
  0x19   : > { %363 = vmatpush3.bf16.msra.mxu0 %v381_v3 }
  0x1c   : > { %365 = vmatmul.mubr.msk.bf16.vlgmr.msra.gmra.mxu0 %vm218_vm0, %v383_v5 }
  0xdc   : > { %v366_v7 = vpop.f32.mrf.mxu0 }
  0xdd   : > { %v268_v9 = vadd.f32 %v366_v7, %v185_v6 }
  0xde   : > { %v259_v10 = vpop.f32.mrf.mxu0 }
  0xdf   : > { %277 = vst.msk [vmem:[%s170_s4 + $0x10] sm:$0x1] %vm276_vm1, %v268_v9  ;;  %v260_v11 = vadd.f32 %v259_v10, %v183_v8 }
  0xe0   : > { %v367_v12 = vpop.f32.mrf.mxu0 }
  0xe1   : > { %274 = vst.msk [vmem:[%s170_s4] sm:$0xff] %vm273_vm2, %v260_v11 }
  0xe2   : > { %v262_v14 = vpop.f32.mrf.mxu0 }
  0xe3   : > { %v263_v15 = vadd.f32 %v262_v14, %v184_v13 }
  0xe5   : > { %275 = vst.msk [vmem:[%s170_s4 + $0x8] sm:$0xff] %vm273_vm2, %v263_v15 }
  0xe6 PF: > { %s13_s12 = sadd.s32 1, %s390_s12  }
  0xe7   : > { %p10_p4 = scmp.ge.s32.totalorder %s13_s12, 4  }
  0xe9   :  { %12 = sbr.rel (!%p10_p4) target bundleno = 1 (0x1), region = 62 }

</bundles_post_ra>
